<compile_context>
chip_gen: v6e
topology: v6e:2x2x1
jax: 0.10.0
libtpu: 0.0.40
codegen_flags: <defaults>
</compile_context>

<pallas_src>
import functools

import jax
import jax.numpy as jnp
from jax.experimental import pallas as pl
from jax.experimental.pallas import tpu as pltpu


def _mix32(h):
    """'lowbias32' integer finalizer: good avalanche, pure 32-bit VPU ops."""
    h = h ^ (h >> jnp.uint32(16))
    h = h * jnp.uint32(0x7FEB352D)
    h = h ^ (h >> jnp.uint32(15))
    h = h * jnp.uint32(0x846CA68B)
    h = h ^ (h >> jnp.uint32(16))
    return h


def _sublayer_connection_body(
    x_ref,        # (TILE_N, H) input tile
    a2_ref,       # (1, H) layernorm gain      (VMEM-resident)
    b2_ref,       # (1, H) layernorm bias      (VMEM-resident)
    w_ref,        # (H, H) sublayer weight     (VMEM-resident)
    bw_ref,       # (1, H) sublayer bias       (VMEM-resident)
    o_ref,        # (TILE_N, H) output tile
    *,
    n_features: int,
    eps: float,
    dropout_p: float,
    training: bool,
    seed_ref=None,   # (1,) int32 in SMEM, only when training & p > 0
):
    x = x_ref[...].astype(jnp.float32)

    # ---- LayerNorm: mean + unbiased std over features, eps added to std ----
    mean = jnp.mean(x, axis=-1, keepdims=True)
    centered = x - mean
    var_unb = jnp.sum(centered * centered, axis=-1, keepdims=True) * (
        1.0 / float(n_features - 1)
    )
    std = jnp.sqrt(var_unb)
    # Per-row reciprocal on the (otherwise idle) EUP slot; the per-element
    # work is then just a broadcast multiply on the VPU.
    inv = pl.reciprocal(std + eps, approx=True)          # (TILE_N, 1)
    normed = (
        a2_ref[...].astype(jnp.float32) * (centered * inv)
        + b2_ref[...].astype(jnp.float32)
    )

    # ---- Sublayer: dense projection on the MXU ----
    # Keep MXU inputs in the weight's dtype (bf16-friendly), accumulate f32.
    y = jnp.dot(
        normed.astype(w_ref.dtype), w_ref[...],
        preferred_element_type=jnp.float32,
    )
    y = y + bw_ref[...].astype(jnp.float32)

    # ---- Dropout (only traced when training and p > 0) ----
    if training and dropout_p > 0.0:
        tile_rows, h_dim = y.shape
        # Counter-based hash PRNG: per-element global index mixed with the
        # seed.  Pure integer VPU ops -> works on Mosaic TPU and in
        # interpret mode (unlike pltpu.prng_*).
        row = jax.lax.broadcasted_iota(jnp.uint32, y.shape, 0)
        col = jax.lax.broadcasted_iota(jnp.uint32, y.shape, 1)
        pid = pl.program_id(0).astype(jnp.uint32)
        gidx = (pid * jnp.uint32(tile_rows) + row) * jnp.uint32(h_dim) + col
        key = (
            seed_ref[0].astype(jnp.uint32) * jnp.uint32(0x9E3779B9)
            + jnp.uint32(0x85EBCA6B)
        )
        bits = _mix32(_mix32(gidx + key) ^ key)
        threshold = jnp.uint32(
            min(int(round(dropout_p * 2.0 ** 32)), 2 ** 32 - 1)
        )
        keep = bits >= threshold                     # P(keep) = 1 - p
        y = jnp.where(keep, y * (1.0 / (1.0 - dropout_p)), 0.0)

    # ---- Residual ----
    o_ref[...] = (x + y).astype(o_ref.dtype)


def _choose_tile_n(n_rows: int, desired: int = 512) -> int:
    """Largest sublane-aligned row tile that divides n_rows, preferring to
    leave >= 2 grid steps so both v7x TensorCores get work."""
    desired = max(1, min(desired, n_rows))
    cands = [d for d in range(8, desired + 1, 8) if n_rows % d == 0]
    two_step = [d for d in cands if n_rows // d >= 2]
    if two_step:
        return max(two_step)
    if cands:
        return max(cands)
    for d in range(desired, 0, -1):
        if n_rows % d == 0:
            return d
    return n_rows


def sublayer_connection(
    x,            # [B, S, H]
    a2, b2,       # [H], [H]     layernorm params
    w, bw,        # [H, H], [H]  sublayer dense params (bf16 recommended)
    *,
    dropout_p: float = 0.1,
    training: bool = False,
    eps: float = 1e-6,
    seed: int = 0,
    tile_n: int | None = None,
    vmem_limit_bytes: int | None = None,
):
    B, S, H = x.shape
    N = B * S
    if tile_n is None:
        tile_n = _choose_tile_n(N, desired=512)
    assert N % tile_n == 0, "row count must be divisible by tile_n"

    x2d = x.reshape(N, H)
    a2_2d = a2.reshape(1, H).astype(jnp.float32)
    b2_2d = b2.reshape(1, H).astype(jnp.float32)
    bw_2d = bw.reshape(1, H).astype(jnp.float32)
    # NOTE: W keeps the caller's dtype (no f32 upcast) -- bf16 W halves
    # HBM/VMEM traffic and runs at full MXU rate with f32 accumulation.

    use_dropout = bool(training) and float(dropout_p) > 0.0

    body = functools.partial(
        _sublayer_connection_body,
        n_features=H,
        eps=float(eps),
        dropout_p=float(dropout_p),
        training=bool(training),
    )

    # Invariant operands: whole-array, VMEM-resident, single-buffered.
    vmem_full = pl.BlockSpec(memory_space=pltpu.MemorySpace.VMEM)

    if use_dropout:
        def kernel(seed_ref, x_ref, a2_ref, b2_ref, w_ref, bw_ref, o_ref):
            body(x_ref, a2_ref, b2_ref, w_ref, bw_ref, o_ref, seed_ref=seed_ref)

        x_spec = pl.BlockSpec((tile_n, H), lambda i, seed: (i, 0))
        o_spec = pl.BlockSpec((tile_n, H), lambda i, seed: (i, 0))
        num_prefetch = 1
        args = (jnp.array([seed], dtype=jnp.int32), x2d, a2_2d, b2_2d, w, bw_2d)
    else:
        def kernel(x_ref, a2_ref, b2_ref, w_ref, bw_ref, o_ref):
            body(x_ref, a2_ref, b2_ref, w_ref, bw_ref, o_ref)

        x_spec = pl.BlockSpec((tile_n, H), lambda i: (i, 0))
        o_spec = pl.BlockSpec((tile_n, H), lambda i: (i, 0))
        num_prefetch = 0
        args = (x2d, a2_2d, b2_2d, w, bw_2d)

    # Only raise the scoped-VMEM limit when the footprint actually needs it.
    if vmem_limit_bytes is None:
        est = (
            2 * tile_n * H * x.dtype.itemsize          # double-buffered x tiles
            + 2 * tile_n * H * x.dtype.itemsize        # double-buffered out tiles
            + H * H * w.dtype.itemsize                 # resident weight
            + 4 * H * 4 + (2 << 20)                    # params + slack
        )
        if est > (28 << 20):
            # Cap at 100 MiB (fits v5e/v6e's 128 MiB physical); on v7x
            # (64 MiB physical) pass an explicit smaller limit / tile_n.
            vmem_limit_bytes = int(min(est + (8 << 20), 100 << 20))

    grid_spec = pltpu.PrefetchScalarGridSpec(
        num_scalar_prefetch=num_prefetch,
        grid=(N // tile_n,),
        in_specs=[x_spec, vmem_full, vmem_full, vmem_full, vmem_full],
        out_specs=o_spec,
    )

    out2d = pl.pallas_call(
        kernel,
        out_shape=jax.ShapeDtypeStruct((N, H), x.dtype),
        grid_spec=grid_spec,
        compiler_params=pltpu.CompilerParams(
            dimension_semantics=("parallel",),
            vmem_limit_bytes=vmem_limit_bytes,
        ),
    )(*args)

    return out2d.reshape(B, S, H)


def _reference(x, a2, b2, w, bw, eps=1e-6):
    """Pure-JAX reference (eval mode: dropout == identity)."""
    xf = x.astype(jnp.float32)
    mean = jnp.mean(xf, axis=-1, keepdims=True)
    centered = xf - mean
    var_unb = jnp.sum(centered ** 2, axis=-1, keepdims=True) / (x.shape[-1] - 1)
    std = jnp.sqrt(var_unb)
    normed = a2 * centered / (std + eps) + b2
    y = normed @ w.astype(jnp.float32) + bw
    return (xf + y).astype(x.dtype)


if __name__ == "__main__":
    B, S, H = 2, 8, 32
    key = jax.random.PRNGKey(0)
    kx, kw = jax.random.split(key)

    x = jax.random.normal(kx, (B, S, H), dtype=jnp.float32)

    # Deterministic parameter init (module __init__ shapes):
    #   LayerNorm(n_features=H): a_2 = ones(H), b_2 = zeros(H)
    #   representative sublayer: dense [H, H] + bias [H]
    a2 = jnp.ones((H,), dtype=jnp.float32)
    b2 = jnp.zeros((H,), dtype=jnp.float32)
    w = 0.02 * jax.random.normal(kw, (H, H), dtype=jnp.float32)
    bw = jnp.zeros((H,), dtype=jnp.float32)

    # --- Eval mode: dropout is identity; compare against pure-JAX reference.
    out = sublayer_connection(x, a2, b2, w, bw, dropout_p=0.1, training=False)
    out = jax.block_until_ready(out)
    ref = _reference(x, a2, b2, w, bw)
    assert out.shape == (B, S, H)
    # Tolerance accounts for the EUP approximate reciprocal used for 1/std.
    assert jnp.allclose(out, ref, atol=2e-3, rtol=2e-3), (
        float(jnp.max(jnp.abs(out - ref)))
    )

    # --- Training mode: dropped positions leave the residual (== x) exact.
    out_tr = sublayer_connection(
        x, a2, b2, w, bw, dropout_p=0.1, training=True, seed=123
    )
    out_tr = jax.block_until_ready(out_tr)
    assert out_tr.shape == (B, S, H)
    assert bool(jnp.all(jnp.isfinite(out_tr)))
    frac_dropped = float(jnp.mean((out_tr == x).astype(jnp.float32)))
    assert 0.01 < frac_dropped < 0.35, frac_dropped

    print("KERNEL_OK")
</pallas_src>

<mosaic_0001>
module attributes {stable_mosaic.version = 11 : i64} {
  func.func @kernel(%arg0: i32, %arg1: memref<8x32xf32, #tpu.memory_space<vmem>>, %arg2: memref<1x32xf32, #tpu.memory_space<vmem>>, %arg3: memref<1x32xf32, #tpu.memory_space<vmem>>, %arg4: memref<32x32xf32, #tpu.memory_space<vmem>>, %arg5: memref<1x32xf32, #tpu.memory_space<vmem>>, %arg6: memref<8x32xf32, #tpu.memory_space<vmem>>) attributes {dimension_semantics = [#tpu.dimension_semantics<parallel>], iteration_bounds = array<i64: 2>, scalar_prefetch = 0 : i64, scratch_operands = 0 : i64, tpu.core_type = #tpu.core_type<tc>, window_params = [{transform_indices = @transform_0, window_bounds = array<i64: 8, 32>}, {pipeline_mode = #tpu.pipeline_mode<synchronous>, transform_indices = @transform_1, window_bounds = array<i64: 1, 32>}, {pipeline_mode = #tpu.pipeline_mode<synchronous>, transform_indices = @transform_2, window_bounds = array<i64: 1, 32>}, {pipeline_mode = #tpu.pipeline_mode<synchronous>, transform_indices = @transform_3, window_bounds = array<i64: 32, 32>}, {pipeline_mode = #tpu.pipeline_mode<synchronous>, transform_indices = @transform_4, window_bounds = array<i64: 1, 32>}, {transform_indices = @transform_5, window_bounds = array<i64: 8, 32>}]} {
    %c0 = arith.constant 0 : index
    %c0_0 = arith.constant 0 : index
    %0 = vector.load %arg1[%c0, %c0_0] : memref<8x32xf32, #tpu.memory_space<vmem>>, vector<8x32xf32>
    %cst = arith.constant dense<0.000000e+00> : vector<8xf32>
    %1 = vector.multi_reduction <add>, %0, %cst [1] : vector<8x32xf32> to vector<8xf32>
    %2 = vector.shape_cast %1 : vector<8xf32> to vector<8x1xf32>
    %cst_1 = arith.constant 3.200000e+01 : f32
    %3 = vector.broadcast %cst_1 : f32 to vector<8x1xf32>
    %4 = arith.divf %2, %3 : vector<8x1xf32>
    %5 = vector.broadcast %4 : vector<8x1xf32> to vector<8x32xf32>
    %6 = arith.subf %0, %5 : vector<8x32xf32>
    %7 = arith.mulf %6, %6 : vector<8x32xf32>
    %cst_2 = arith.constant dense<0.000000e+00> : vector<8xf32>
    %8 = vector.multi_reduction <add>, %7, %cst_2 [1] : vector<8x32xf32> to vector<8xf32>
    %9 = vector.shape_cast %8 : vector<8xf32> to vector<8x1xf32>
    %cst_3 = arith.constant 0.0322580636 : f32
    %10 = vector.broadcast %cst_3 : f32 to vector<8x1xf32>
    %11 = arith.mulf %9, %10 : vector<8x1xf32>
    %12 = math.sqrt %11 : vector<8x1xf32>
    %cst_4 = arith.constant 9.99999997E-7 : f32
    %13 = vector.broadcast %cst_4 : f32 to vector<8x1xf32>
    %14 = arith.addf %12, %13 : vector<8x1xf32>
    %15 = tpu.reciprocal %14 {approx = true} : vector<8x1xf32> -> vector<8x1xf32>
    %c0_5 = arith.constant 0 : index
    %c0_6 = arith.constant 0 : index
    %16 = vector.load %arg2[%c0_5, %c0_6] : memref<1x32xf32, #tpu.memory_space<vmem>>, vector<1x32xf32>
    %17 = vector.broadcast %15 : vector<8x1xf32> to vector<8x32xf32>
    %18 = arith.mulf %6, %17 : vector<8x32xf32>
    %19 = vector.broadcast %16 : vector<1x32xf32> to vector<8x32xf32>
    %20 = arith.mulf %19, %18 : vector<8x32xf32>
    %c0_7 = arith.constant 0 : index
    %c0_8 = arith.constant 0 : index
    %21 = vector.load %arg3[%c0_7, %c0_8] : memref<1x32xf32, #tpu.memory_space<vmem>>, vector<1x32xf32>
    %22 = vector.broadcast %21 : vector<1x32xf32> to vector<8x32xf32>
    %23 = arith.addf %20, %22 : vector<8x32xf32>
    %c0_9 = arith.constant 0 : index
    %c0_10 = arith.constant 0 : index
    %24 = vector.load %arg4[%c0_9, %c0_10] : memref<32x32xf32, #tpu.memory_space<vmem>>, vector<32x32xf32>
    %cst_11 = arith.constant dense<0.000000e+00> : vector<8x32xf32>
    %25 = tpu.matmul %23, %24, %cst_11 {dimension_numbers = #tpu.dot_dimension_numbers<[1], [0], [0], [1], [0, 0, 1, 1], [], []>} : vector<8x32xf32>, vector<32x32xf32>, vector<8x32xf32> -> vector<8x32xf32>
    %c0_12 = arith.constant 0 : index
    %c0_13 = arith.constant 0 : index
    %26 = vector.load %arg5[%c0_12, %c0_13] : memref<1x32xf32, #tpu.memory_space<vmem>>, vector<1x32xf32>
    %27 = vector.broadcast %26 : vector<1x32xf32> to vector<8x32xf32>
    %28 = arith.addf %25, %27 : vector<8x32xf32>
    %29 = arith.addf %0, %28 : vector<8x32xf32>
    %c0_14 = arith.constant 0 : index
    %c0_15 = arith.constant 0 : index
    %30 = vector.load %arg6[%c0_14, %c0_15] : memref<8x32xf32, #tpu.memory_space<vmem>>, vector<8x32xf32>
    tpu.vector_store %arg6[%c0_14, %c0_15], %29 {strides = array<i32>} : memref<8x32xf32, #tpu.memory_space<vmem>>, vector<8x32xf32>,
    return
  }
  func.func @transform_0(%arg0: i32) -> (i32, i32) {
    %c0_i32 = arith.constant 0 : i32
    %c0_i32_0 = arith.constant 0 : i32
    return %arg0, %c0_i32 : i32, i32
  }
  func.func @transform_1(%arg0: i32) -> (i32, i32) {
    %c0_i32 = arith.constant 0 : i32
    %c0_i32_0 = arith.constant 0 : i32
    %c0_i32_1 = arith.constant 0 : i32
    return %c0_i32, %c0_i32_0 : i32, i32
  }
  func.func @transform_2(%arg0: i32) -> (i32, i32) {
    %c0_i32 = arith.constant 0 : i32
    %c0_i32_0 = arith.constant 0 : i32
    %c0_i32_1 = arith.constant 0 : i32
    return %c0_i32, %c0_i32_0 : i32, i32
  }
  func.func @transform_3(%arg0: i32) -> (i32, i32) {
    %c0_i32 = arith.constant 0 : i32
    %c0_i32_0 = arith.constant 0 : i32
    %c0_i32_1 = arith.constant 0 : i32
    return %c0_i32, %c0_i32_0 : i32, i32
  }
  func.func @transform_4(%arg0: i32) -> (i32, i32) {
    %c0_i32 = arith.constant 0 : i32
    %c0_i32_0 = arith.constant 0 : i32
    %c0_i32_1 = arith.constant 0 : i32
    return %c0_i32, %c0_i32_0 : i32, i32
  }
  func.func @transform_5(%arg0: i32) -> (i32, i32) {
    %c0_i32 = arith.constant 0 : i32
    %c0_i32_0 = arith.constant 0 : i32
    return %arg0, %c0_i32 : i32, i32
  }
}

</mosaic_0001>

<bundles_post_ra>
// kernel: tpu_custom_call.1
= control target key start
LH: loop header
LB: loop body
LE: loop exit
PB: predicated region body
PF: predicated region fallthrough
CT: control target
= control target key end

     0   :  { %10 = vsyncpa [#allocation3], 0  ;;  %s905_s0 = inlined_call_operand.hbm [shape: f32[16,32], index: 0, kind: input, shape index: {}]   ;;  %s906_s1 = inlined_call_operand.vmem [shape: f32[1,32], index: 1, kind: input, shape index: {}]   ;;  %s907_s2 = inlined_call_operand.vmem [shape: f32[1,32], index: 2, kind: input, shape index: {}]   ;;  %s908_s3 = inlined_call_operand.hbm [shape: f32[32,32], index: 3, kind: input, shape index: {}]   ;;  %s909_s4 = inlined_call_operand.vmem [shape: f32[1,32], index: 4, kind: input, shape index: {}]   ;;  %s910_s5 = inlined_call_operand.hbm [shape: f32[16,32], index: 5, kind: output, shape index: {}]  }
   0x1   :  { %12 = vsyncpa [#allocation3 + $0x1], 0 }
   0x2   :  { %13 = vsyncpa [#allocation6], 0 }
   0x3   :  { %14 = vsyncpa [#allocation4], 0 }
   0x4   :  { %16 = vsyncpa [#allocation4 + $0x1], 0  ;;  %s734_s18 = smov 0   ;;  %s736_s19 = smov 0  }
   0x5   :  { %s738_s20 = smov 0   ;;  %s740_s21 = smov 0  }
   0x6 LB: > { %s755_s22 = sadd.s32 4294967295, %s695_s21   ;;  %s474_s23 = sadd.s32 4294967294, %s695_s21   ;;  %s695_s21 = sphi %s740_s21, %s932_s21   ;;  %s691_s20 = sphi %s738_s20, %s931_s20   ;;  %s687_s19 = sphi %s736_s19, %s930_s19   ;;  %s683_s18 = sphi %s734_s18, %s929_s18  }
   0x7   : > { %p42_p0 = scmp.ne.s32.totalorder %s687_s19, %s683_s18  ;;  %p911_p1 = scmp.eq.s32.totalorder %s755_s22, 0 }
   0x8   : > { %p156_p3 = scmp.eq.s32.totalorder %s474_s23, 1  ;;  %p475_p5 = scmp.ge.s32.totalorder %s695_s21, 1 }
   0x9   : > { %p764_p4 = por %p911_p1, %p42_p0  ;;  %p163_p7 = scmp.lt.s32.totalorder %s695_s21, 3 }
   0xa   : > { %p769_p6 = por %p156_p3, %p42_p0  ;;  %s697_s27 = smov [#allocation5]  }
   0xb   : > { %s915_s24 = scalar_select %p764_p4, 1, 0 }
   0xc   : > { %s916_s25 = scalar_select %p769_p6, 1, 0 }
   0xd   : > { %p774_p8 = pnand %p475_p5, %p163_p7  ;;  %s181_s28 = sshll.u32 %s697_s27, 4  ;;  %s182_s28 = int_to_ptr.vmem [resolvable:$true] %s181_s28 }
   0xe   : > { %s788_s30 = sadd.s32 1, %s695_s21   ;;  %s29_s6 = sadd.s32 1, %s691_s20 }
   0xf   : > { %s917_s26 = scalar_select %p774_p8, 1, 0 }
  0x10   : > { %p516_p9 = pneg %p774_p8  ;;  %s26_s7 = ssub.s32 %s695_s21, %s788_s30 }
  0x11   : > { %s584_s8 = scalar_lea.vmem %s182_s28, 512  ;;  %p592_p5 = scmp.lt.s32.totalorder %s182_s28, %s182_s28 }
  0x12   : > { %p783_p11 = pnand %p516_p9, %p911_p1  ;;  %p585_p13 = scmp.ne.s32.totalorder %s182_s28, %s584_s8 }
  0x13   : > { %p593_p7 = scmp.lt.s32.totalorder %s584_s8, %s584_s8 }
  0x14   : > { %p575_p12 = pneg %p783_p11 }
  0x15   : > { %p594_p10 = por %p593_p7, %p592_p5 }
  0x16   : > { %p587_p0 = pnand %p585_p13, %p575_p12 }
  0x18   : > { %p588_p3 = pneg %p587_p0 }
  0x1a   : > { %p595_p2 = pnand %p594_p10, %p588_p3 }
  0x1c   : > { %598 = shalt.err (!%p595_p2)
}
  0x1d   : > { %s698_s9 = smov 128   ;;  %s699_s10 = smov 8  }
  0x1e   : > { %519 = dma.hbm_to_vmem [thread:$0]  (!%p783_p11), %s908_s3, 512, %s182_s28, [#allocation6], %s698_s9, %s698_s9, %s699_s10  }
  0x1f   : > { %p27_p9 = scmp.eq.s32.totalorder %s26_s7, 0  ;;  %p36_p12 = scmp.ne.s32.totalorder %s691_s20, %s687_s19 }
  0x20   : > { %p37_p10 = scmp.eq.s32.totalorder %s695_s21, 0  ;;  %p529_p2 = scmp.lt.s32.totalorder %s695_s21, 2 }
  0x21   : > { %s805_s13 = scalar_select %p27_p9, %s691_s20, %s29_s6  }
  0x22   : > { %p38_p13 = por %p37_p10, %p36_p12  ;;  %p919_p0 = scmp.eq.s32.totalorder %s755_s22, 1 }
  0x23   : > { %s198_s15 = sand.u32 1, %s691_s20   ;;  %s479_s16 = sshll.u32 %s695_s21, 7 }
  0x24   : > { %p809_p3 = por %p919_p0, %p36_p12  ;;  %s478_s17 = sshll.u32 %s198_s15, 3 }
  0x25   : > { %s818_s29 = scalar_lea.hbm %s905_s0, %s479_s16  ;;  %s202_s28 = scalar_lea.vmem [#allocation2], %s478_s17 }
  0x26   : > { %s920_s14 = scalar_select %p809_p3, 1, 0 }
  0x27   : > { %s209_s6 = sshll.u32 %s202_s28, 4  ;;  %p820_p11 = pnand %p529_p2, %p38_p13  ;;  %s210_s6 = int_to_ptr.vmem [resolvable:$true] %s209_s6 }
  0x28   : > { %s199_s8 = scalar_lea.sflag [#allocation3], %s198_s15  ;;  %s599_s9 = scalar_lea.hbm %s818_s29, 128 }
  0x29   : > { %p600_p5 = scmp.ne.s32.totalorder %s818_s29, %s599_s9  ;;  %p601_p7 = pneg %p820_p11 }
  0x2a   : > { %s604_s12 = scalar_lea.hbm %s905_s0, 256  ;;  %p605_p10 = scmp.lt.s32.totalorder %s818_s29, %s905_s0 }
  0x2b   : > { %p602_p9 = pnand %p601_p7, %p600_p5  ;;  %p606_p2 = scmp.lt.s32.totalorder %s604_s12, %s599_s9 }
  0x2d   : > { %p603_p12 = pneg %p602_p9  ;;  %p607_p13 = por %p606_p2, %p605_p10 }
  0x2f   : > { %p608_p0 = pnand %p607_p13, %p603_p12 }
  0x31   : > { %611 = shalt.err (!%p608_p0)
}
  0x32   : > { %s612_s23 = scalar_lea.vmem %s210_s6, 128  ;;  %s700_s15 = smov [#allocation2]  }
  0x33   : > { %p613_p1 = scmp.ne.s32.totalorder %s210_s6, %s612_s23  ;;  %s617_s27 = sshll.u32 %s700_s15, 4  ;;  %s618_s27 = int_to_ptr.vmem [resolvable:$false] %s617_s27 }
  0x34   : > { %s619_s28 = scalar_lea.vmem %s618_s27, 256  ;;  %p620_p5 = scmp.lt.s32.totalorder %s210_s6, %s618_s27 }
  0x35   : > { %p615_p6 = pnand %p613_p1, %p601_p7  ;;  %p621_p9 = scmp.lt.s32.totalorder %s619_s28, %s612_s23 }
  0x37   : > { %p616_p3 = pneg %p615_p6  ;;  %p622_p4 = por %p621_p9, %p620_p5 }
  0x39   : > { %p623_p8 = pnand %p622_p4, %p616_p3 }
  0x3b   : > { %626 = shalt.err (!%p623_p8)
}
  0x3c   : > { %523 = dma.hbm_to_vmem [thread:$0]  (!%p820_p11), %s818_s29, 128, %s210_s6, %s199_s8  }
  0x3d   : > { %p922_p12 = scmp.ne.s32.totalorder %s917_s26, 0 }
  0x3e   : > { %s841_s9 = sand.u32 (!%p922_p12), 1, %s687_s19   ;;  %p923_p1 = scmp.ne.s32.totalorder (!%p922_p12), %s915_s24, 0 }
  0x3f   : > { %218 = sbr.rel (%p922_p12) target bundleno = 609 (0x261), region = 40  ;;  %s481_s10 = sshll.u32 (!%p922_p12), %s841_s9, 3 }
  0x40   : > { %s221_s11 = scalar_lea.sflag (!%p922_p12), [#allocation3], %s841_s9  ;;  %s224_s12 = scalar_lea.vmem (!%p922_p12), [#allocation2], %s481_s10 }
  0x44   : > { %670 = dma.done.wait (%p923_p1), %s221_s11, 128  }
  0x45   : > { %672 = vsyncadd (%p923_p1), %s221_s11, 4294967168  ;;  %p924_p4 = scmp.eq.s32.totalorder %s755_s22, 0 }
  0x47   : > { %674 = dma.done.wait (%p924_p4), [#allocation6], 512   ;;  %p925_p6 = pmov %p924_p4 }
  0x48   : > { %vm256_vm0 = vcmask 261120   ;;  %v255_v0 = vld [vmem:[%s224_s12] sm:$0xff]  ;;  %v701_v8 = vmov 0.0   ;;  %vm702_vm1 = vmmov 0   ;;  %v295_v10 = vld [vmem:[#allocation5 + $0x8] sm:$0xff]  ;;  %v294_v11 = vld [vmem:[#allocation5] sm:$0xff] }
  0x49   : > { %676 = vsyncadd (%p925_p6), [#allocation6], 4294966784  ;;  %v257_v1 = vsel %vm256_vm0, %v255_v0, 0.0  ;;  %v297_v7 = vld [vmem:[#allocation5 + $0x18] sm:$0xff]  ;;  %497 = vmatprep.subr.mxu0 %v701_v8  ;;  %v296_v9 = vld [vmem:[#allocation5 + $0x10] sm:$0xff]  ;;  %505 = vmatprep.mubr.msk.f32.mxu0 %vm702_vm1, %v701_v8  ;;  %s489_s16 = sshll.u32 %s755_s22, 7 }
  0x4a   : > { %258 = vadd.xlane.f32.xlu0 %v257_v1  ;;  %498 = vmatpush3.msra.mxu0 %v297_v7  ;;  %v484_v21 = vld [vmem:[%s906_s1] ss:$0 sm:$0xff]  ;;  %s254_s17 = scalar_lea.vmem [#allocation7], %s481_s10  ;;  %s392_s28 = scalar_lea.hbm %s910_s5, %s489_s16 }
  0x4b   : > { %499 = vmatprep.subr.mxu0 %v701_v8  ;;  %v485_v23 = vld [vmem:[%s907_s2] ss:$0 sm:$0xff]  ;;  %s394_s23 = sshll.u32 %s254_s17, 4  ;;  %s381_s11 = scalar_lea.sflag [#allocation4], %s841_s9  ;;  %s395_s23 = int_to_ptr.vmem [resolvable:$true] %s394_s23 }
  0x4c   : > { %500 = vmatpush3.msra.mxu0 %v296_v9  ;;  %v486_v26 = vld [vmem:[%s909_s4] ss:$0 sm:$0xff]  ;;  %s627_s12 = scalar_lea.vmem %s395_s23, 128  ;;  %p926_p3 = scmp.ne.s32.totalorder %s920_s14, 0 }
  0x4d   : > { %501 = vmatprep.subr.mxu0 %v701_v8  ;;  %p628_p8 = scmp.ne.s32.totalorder %s395_s23, %s627_s12  ;;  %s703_s22 = smov [#allocation7]  }
  0x4e   : > { %502 = vmatpush3.msra.mxu0 %v295_v10  ;;  %s631_s24 = sshll.u32 %s703_s22, 4  ;;  %s632_s24 = int_to_ptr.vmem [resolvable:$false] %s631_s24 }
  0x4f   : > { %503 = vmatprep.subr.mxu0 %v701_v8  ;;  %p629_p11 = pnand %p628_p8, %p926_p3  ;;  %s633_s10 = scalar_lea.vmem %s632_s24, 256 }
  0x50   : > { %504 = vmatpush3.msra.mxu0 %v294_v11  ;;  %p634_p10 = scmp.lt.s32.totalorder %s395_s23, %s632_s24  ;;  %p635_p2 = scmp.lt.s32.totalorder %s633_s10, %s627_s12 }
  0x51   : > { %p630_p7 = pneg %p629_p11 }
  0x52   : > { %p636_p13 = por %p635_p2, %p634_p10 }
  0x54   : > { %p637_p0 = pnand %p636_p13, %p630_p7 }
  0xd3   : > { %v259_v2 = vpop.xlane.xlu0 %258 }
  0xd4   : > { %v261_v3 = vmul.f32 0.03125, %v259_v2 }
  0xd6   : > { %v262_v4 = vsub.f32 %v255_v0, %v261_v3 }
  0xd8   : > { %v263_v5 = vmul.f32 %v262_v4, %v262_v4 }
  0xda   : > { %v264_v6 = vsel %vm256_vm0, %v263_v5, 0.0 }
  0xdb   : > { %265 = vadd.xlane.f32.xlu0 %v264_v6 }
 0x164   : > { %v266_v12 = vpop.xlane.xlu0 %265 }
 0x165   : > { %v267_v13 = vmul.f32 0.032258064, %v266_v12 }
 0x167   : > { %569 = vrsqrt.f32 %v267_v13  ;;  %vm270_vm2 = vcmp.eq.f32.partialorder %v267_v13, inf  ;;  %v273_v16 = vand.u32 2147483648, %v267_v13  ;;  %vm272_vm3 = vcmp.eq.f32.partialorder %v267_v13, 0.0 }
 0x174   : > { %v570_v14 = vpop.eup %569 }
 0x175   : > { %v269_v15 = vmul.f32 %v570_v14, %v267_v13 }
 0x177   : > { %v271_v17 = vsel %vm270_vm2, %v267_v13, %v269_v15 }
 0x178   : > { %v274_v18 = vsel %vm272_vm3, %v273_v16, %v271_v17 }
 0x179   : > { %v275_v19 = vadd.f32 1e-06, %v274_v18 }
 0x17b   : > { %571 = vrcp.f32 %v275_v19 }
 0x188   : > { %v572_v20 = vpop.eup %571 }
 0x189   : > { %v278_v22 = vmul.f32 %v572_v20, %v262_v4 }
 0x18b   : > { %v285_v24 = vmul.f32 %v484_v21, %v278_v22 }
 0x18d   : > { %v293_v25 = vadd.f32 %v485_v23, %v285_v24 }
 0x18f   : > { %506 = vmatmul.mubr.msk.f32.vlgmr.msra.gmra.mxu0 %vm256_vm0, %v293_v25 }
 0x24f   : > { %v374_v27 = vpop.f32.mrf.mxu0 }
 0x250   : > { %v375_v28 = vadd.f32 %v486_v26, %v374_v27 }
 0x251   : > { %v507_v29 = vpop.f32.mrf.mxu0 }
 0x252   : > { %v378_v30 = vadd.f32 %v375_v28, %v255_v0 }
 0x254   : > { %379 = vst.msk [vmem:[%s254_s17] sm:$0xff] %vm256_vm0, %v378_v30 }
 0x255   : > { %640 = shalt.err (!%p637_p0)
}
 0x256   : > { %s641_s26 = scalar_lea.hbm %s392_s28, 128  ;;  %s645_s6 = scalar_lea.hbm %s910_s5, 256 }
 0x257   : > { %p642_p5 = scmp.ne.s32.totalorder %s392_s28, %s641_s26  ;;  %p646_p1 = scmp.lt.s32.totalorder %s392_s28, %s910_s5 }
 0x258   : > { %p647_p4 = scmp.lt.s32.totalorder %s645_s6, %s641_s26 }
 0x259   : > { %p643_p9 = pnand %p642_p5, %p926_p3 }
 0x25a   : > { %p648_p6 = por %p647_p4, %p646_p1 }
 0x25b   : > { %p644_p12 = pneg %p643_p9 }
 0x25d   : > { %p649_p8 = pnand %p648_p6, %p644_p12 }
 0x25f   : > { %652 = shalt.err (!%p649_p8)
}
 0x260   : > { %514 = dma.vmem_to_hbm [thread:$0]  (%p926_p3), %s395_s23, 128, %s392_s28, %s381_s11  }
 0x261 PF: > { %s406_s16 = sand.u32 1, %s683_s18   ;;  %p927_p11 = scmp.ne.s32.totalorder %s916_s25, 0 }
 0x262   : > { %p928_p7 = scmp.ge.s32.totalorder %s695_s21, 2  ;;  %s407_s17 = scalar_lea.sflag [#allocation4], %s406_s16 }
 0x264   : > { %p525_p10 = pnand %p928_p7, %p927_p11 }
 0x266   : > { %p526_p2 = pneg %p525_p10 }
 0x268   : > { %678 = dma.done.wait (%p526_p2), %s407_s17, 128  }
 0x269   : > { %680 = vsyncadd (%p526_p2), %s407_s17, 4294967168  ;;  %p19_p13 = scmp.ge.s32.totalorder %s788_s30, 4   ;;  %s929_s18 = smov %s687_s19 }
 0x26a   : > { %s930_s19 = smov %s691_s20  ;;  %s931_s20 = smov %s805_s13 }
 0x26b   : > { %s932_s21 = smov %s788_s30  ;;  %21 = sbr.rel (!%p19_p13) target bundleno = 6 (0x6), region = 89 }
 0x270   :  { %412 = vsyncpa [#allocation3], 1 }
 0x271   :  { %414 = vsyncpa [#allocation3 + $0x1], 1 }
 0x272   :  { %415 = vsyncpa [#allocation6], 1 }
 0x273   :  { %416 = vsyncpa [#allocation4], 1 }
 0x274   :  { %418 = vsyncpa [#allocation4 + $0x1], 1 }

</bundles_post_ra>
